<compile_context>
chip_gen: v6e
topology: v6e:2x2x1
jax: 0.10.0
libtpu: 0.0.40
codegen_flags: <defaults>
</compile_context>

<pallas_src>
import jax
import jax.numpy as jnp
from jax import lax
from jax.experimental import pallas as pl
from jax.experimental.pallas import tpu as pltpu


_SUBLANE = 16        # bf16 sublane packing -> batch tiles in multiples of 16
_SUB_ROWS = 256      # in-kernel sub-chunk so the MXU drain of one chunk hides
                     # under the next chunk's first matmul


def _round_up(n, m):
    return ((n + m - 1) // m) * m


def _mlp_kernel(x_ref,
                w1_ref, b1_ref,
                w2_ref, b2_ref,
                w3_ref, b3_ref,
                w4_ref, b4_ref,
                o_ref):
    # Weights / biases are tiny and VMEM-resident (single-buffered): load once
    # per grid step, reused by every sub-chunk below.
    w1 = w1_ref[...]; b1 = b1_ref[...]
    w2 = w2_ref[...]; b2 = b2_ref[...]
    w3 = w3_ref[...]; b3 = b3_ref[...]
    w4 = w4_ref[...]          # (1, u3) f32 row of the final layer
    b4 = b4_ref[...]          # (1, 1)  f32

    tile = x_ref.shape[0]
    sub = _SUB_ROWS if tile % _SUB_ROWS == 0 else tile
    n_sub = tile // sub

    def chunk(j, carry):
        r = pl.multiple_of(j * sub, sub)
        x = x_ref[pl.ds(r, sub), :]                                    # bf16

        # Layer 1: (sub, x_dim) @ (x_dim, u1) -> f32 acc, ReLU, back to bf16.
        h = jnp.dot(x, w1, preferred_element_type=jnp.float32) + b1
        h = jnp.maximum(h, 0.0).astype(jnp.bfloat16)

        # Layer 2.
        h = jnp.dot(h, w2, preferred_element_type=jnp.float32) + b2
        h = jnp.maximum(h, 0.0).astype(jnp.bfloat16)

        # Layer 3 (kept in f32: it feeds a VPU multiply, not the MXU).
        h = jnp.dot(h, w3, preferred_element_type=jnp.float32) + b3
        h = jnp.maximum(h, 0.0)                                        # f32

        # Final (u3 -> 1) layer via VPU multiply + XLU lane reduce (avoids a
        # 1-result-column MXU matmul).
        out = jnp.sum(h * w4, axis=-1, keepdims=True) + b4
        o_ref[pl.ds(r, sub), :] = out.astype(o_ref.dtype)
        return carry

    lax.fori_loop(0, n_sub, chunk, 0, unroll=True)


def fully_connected_forward(x, params, *, batch_tile=512):
    """Eval-mode forward.  x: (B, x_dim) float.  Returns (B, 1) float32."""
    B, x_dim = x.shape
    w1, b1 = params["w1"], params["b1"]   # (x_dim, u1) bf16, (1, u1) f32
    w2, b2 = params["w2"], params["b2"]   # (u1,   u2) bf16, (1, u2) f32
    w3, b3 = params["w3"], params["b3"]   # (u2,   u3) bf16, (1, u3) f32
    w4, b4 = params["w4"], params["b4"]   # (1,    u3) f32,  (1,  1) f32

    # Batch tiling: big tiles amortize per-step grid overhead and keep the MXU
    # rows full; round to the bf16 sublane multiple and zero-pad ragged batches
    # (padded rows are sliced off below).
    batch_tile = max(_SUBLANE, _round_up(batch_tile, _SUBLANE))
    tile = min(batch_tile, _round_up(B, _SUBLANE))
    b_pad = _round_up(B, tile)

    xb = x.astype(jnp.bfloat16)
    if b_pad != B:
        xb = jnp.pad(xb, ((0, b_pad - B), (0, 0)))

    grid = (b_pad // tile,)

    # Constant index_map -> weights never change across the grid; single-buffer
    # them so default double-buffering doesn't burn 2x VMEM for zero overlap.
    def resident(a):
        return pl.BlockSpec(a.shape, lambda i: (0,) * a.ndim,
                            pipeline_mode=pl.Buffered(1))

    out = pl.pallas_call(
        _mlp_kernel,
        out_shape=jax.ShapeDtypeStruct((b_pad, 1), jnp.float32),
        grid_spec=pltpu.PrefetchScalarGridSpec(
            num_scalar_prefetch=0,
            grid=grid,
            in_specs=[
                pl.BlockSpec((tile, x_dim), lambda i: (i, 0)),   # streamed x
                resident(w1), resident(b1),
                resident(w2), resident(b2),
                resident(w3), resident(b3),
                resident(w4), resident(b4),
            ],
            out_specs=pl.BlockSpec((tile, 1), lambda i: (i, 0)),
        ),
        compiler_params=pltpu.CompilerParams(
            # Single batch axis: independent tiles -> megacore-shardable.
            dimension_semantics=("parallel",),
            # Explicit budget: well inside v5e's scoped default and v7x's
            # 64 MiB physical VMEM at these hidden sizes.
            vmem_limit_bytes=32 * 1024 * 1024,
        ),
    )(xb, w1, b1, w2, b2, w3, b3, w4, b4)

    return out[:B]


def init_params(key, x_dim, u1, u2, u3):
    """PyTorch-style nn.Linear init: U(-1/sqrt(fan_in), 1/sqrt(fan_in)).

    Hidden weights stored pre-transposed (in, out) in bf16; biases f32.
    Final layer stored as a (1, u3) f32 row for the VPU/XLU reduce path.
    """
    def linear(k, fan_in, fan_out):
        kw, kb = jax.random.split(k)
        bound = 1.0 / jnp.sqrt(jnp.float32(fan_in))
        w = jax.random.uniform(kw, (fan_in, fan_out), jnp.float32, -bound, bound)
        b = jax.random.uniform(kb, (1, fan_out), jnp.float32, -bound, bound)
        return w, b

    k1, k2, k3, k4 = jax.random.split(key, 4)
    w1, b1 = linear(k1, x_dim, u1)
    w2, b2 = linear(k2, u1, u2)
    w3, b3 = linear(k3, u2, u3)
    w4, b4 = linear(k4, u3, 1)
    return {
        "w1": w1.astype(jnp.bfloat16), "b1": b1,
        "w2": w2.astype(jnp.bfloat16), "b2": b2,
        "w3": w3.astype(jnp.bfloat16), "b3": b3,
        "w4": w4.T,                    "b4": b4,   # (1, u3) f32 row
    }


def _reference_forward(x, p):
    """Pure-JAX reference with the same dtype schedule as the kernel."""
    h = x.astype(jnp.bfloat16)
    h = jnp.maximum(jnp.dot(h, p["w1"], preferred_element_type=jnp.float32) + p["b1"], 0.0)
    h = jnp.maximum(jnp.dot(h.astype(jnp.bfloat16), p["w2"],
                            preferred_element_type=jnp.float32) + p["b2"], 0.0)
    h = jnp.maximum(jnp.dot(h.astype(jnp.bfloat16), p["w3"],
                            preferred_element_type=jnp.float32) + p["b3"], 0.0)
    return jnp.sum(h * p["w4"], axis=-1, keepdims=True) + p["b4"]


if __name__ == "__main__":
    key = jax.random.PRNGKey(0)
    kx, kp = jax.random.split(key)

    x_dim, u1, u2, u3 = 32, 64, 48, 32
    params = init_params(kp, x_dim, u1, u2, u3)

    # (1) ragged batch -> exercises the zero-pad tail path (single tile).
    x1 = jax.random.normal(kx, (40, x_dim), jnp.float32)
    out1 = jax.block_until_ready(fully_connected_forward(x1, params))
    ref1 = _reference_forward(x1, params)
    assert out1.shape == (40, 1), out1.shape
    assert jnp.allclose(out1, ref1, atol=2e-3, rtol=2e-3), \
        f"max abs err {jnp.max(jnp.abs(out1 - ref1))}"

    # (2) multi-tile grid (4 parallel batch tiles).
    x2 = jax.random.normal(kx, (128, x_dim), jnp.float32)
    out2 = jax.block_until_ready(fully_connected_forward(x2, params, batch_tile=32))
    ref2 = _reference_forward(x2, params)
    assert out2.shape == (128, 1), out2.shape
    assert jnp.allclose(out2, ref2, atol=2e-3, rtol=2e-3), \
        f"max abs err {jnp.max(jnp.abs(out2 - ref2))}"

    # (3) large batch, default tile (512) -> exercises the sub-chunk fori_loop.
    x3 = jax.random.normal(kx, (1024, x_dim), jnp.float32)
    out3 = jax.block_until_ready(fully_connected_forward(x3, params))
    ref3 = _reference_forward(x3, params)
    assert out3.shape == (1024, 1), out3.shape
    assert jnp.allclose(out3, ref3, atol=2e-3, rtol=2e-3), \
        f"max abs err {jnp.max(jnp.abs(out3 - ref3))}"

    print("KERNEL_OK")
</pallas_src>

<mosaic_0001>
module attributes {stable_mosaic.version = 11 : i64} {
  func.func @_mlp_kernel(%arg0: i32, %arg1: memref<48x32xbf16, #tpu.memory_space<vmem>>, %arg2: memref<32x64xbf16, #tpu.memory_space<vmem>>, %arg3: memref<1x64xf32, #tpu.memory_space<vmem>>, %arg4: memref<64x48xbf16, #tpu.memory_space<vmem>>, %arg5: memref<1x48xf32, #tpu.memory_space<vmem>>, %arg6: memref<48x32xbf16, #tpu.memory_space<vmem>>, %arg7: memref<1x32xf32, #tpu.memory_space<vmem>>, %arg8: memref<1x32xf32, #tpu.memory_space<vmem>>, %arg9: memref<1x1xf32, #tpu.memory_space<vmem>>, %arg10: memref<48x1xf32, #tpu.memory_space<vmem>>) attributes {dimension_semantics = [#tpu.dimension_semantics<parallel>], iteration_bounds = array<i64: 1>, scalar_prefetch = 0 : i64, scratch_operands = 0 : i64, tpu.core_type = #tpu.core_type<tc>, window_params = [{transform_indices = @transform_0, window_bounds = array<i64: 48, 32>}, {pipeline_mode = #tpu.pipeline_mode<synchronous>, transform_indices = @transform_1, window_bounds = array<i64: 32, 64>}, {pipeline_mode = #tpu.pipeline_mode<synchronous>, transform_indices = @transform_2, window_bounds = array<i64: 1, 64>}, {pipeline_mode = #tpu.pipeline_mode<synchronous>, transform_indices = @transform_3, window_bounds = array<i64: 64, 48>}, {pipeline_mode = #tpu.pipeline_mode<synchronous>, transform_indices = @transform_4, window_bounds = array<i64: 1, 48>}, {pipeline_mode = #tpu.pipeline_mode<synchronous>, transform_indices = @transform_5, window_bounds = array<i64: 48, 32>}, {pipeline_mode = #tpu.pipeline_mode<synchronous>, transform_indices = @transform_6, window_bounds = array<i64: 1, 32>}, {pipeline_mode = #tpu.pipeline_mode<synchronous>, transform_indices = @transform_7, window_bounds = array<i64: 1, 32>}, {pipeline_mode = #tpu.pipeline_mode<synchronous>, transform_indices = @transform_8, window_bounds = array<i64: 1, 1>}, {transform_indices = @transform_9, window_bounds = array<i64: 48, 1>}]} {
    %c0 = arith.constant 0 : index
    %c0_0 = arith.constant 0 : index
    %0 = vector.load %arg2[%c0, %c0_0] : memref<32x64xbf16, #tpu.memory_space<vmem>>, vector<32x64xbf16>
    %c0_1 = arith.constant 0 : index
    %c0_2 = arith.constant 0 : index
    %1 = vector.load %arg3[%c0_1, %c0_2] : memref<1x64xf32, #tpu.memory_space<vmem>>, vector<1x64xf32>
    %c0_3 = arith.constant 0 : index
    %c0_4 = arith.constant 0 : index
    %2 = vector.load %arg4[%c0_3, %c0_4] : memref<64x48xbf16, #tpu.memory_space<vmem>>, vector<64x48xbf16>
    %c0_5 = arith.constant 0 : index
    %c0_6 = arith.constant 0 : index
    %3 = vector.load %arg5[%c0_5, %c0_6] : memref<1x48xf32, #tpu.memory_space<vmem>>, vector<1x48xf32>
    %c0_7 = arith.constant 0 : index
    %c0_8 = arith.constant 0 : index
    %4 = vector.load %arg6[%c0_7, %c0_8] : memref<48x32xbf16, #tpu.memory_space<vmem>>, vector<48x32xbf16>
    %c0_9 = arith.constant 0 : index
    %c0_10 = arith.constant 0 : index
    %5 = vector.load %arg7[%c0_9, %c0_10] : memref<1x32xf32, #tpu.memory_space<vmem>>, vector<1x32xf32>
    %c0_11 = arith.constant 0 : index
    %c0_12 = arith.constant 0 : index
    %6 = vector.load %arg8[%c0_11, %c0_12] : memref<1x32xf32, #tpu.memory_space<vmem>>, vector<1x32xf32>
    %c0_13 = arith.constant 0 : index
    %c0_14 = arith.constant 0 : index
    %7 = vector.load %arg9[%c0_13, %c0_14] : memref<1x1xf32, #tpu.memory_space<vmem>>, vector<1x1xf32>
    %c0_i32 = arith.constant 0 : i32
    %c48_i32 = arith.constant 48 : i32
    %8 = arith.muli %c0_i32, %c48_i32 : i32
    %9 = tpu.assume_multiple %8, 48 : i32
    %10 = arith.index_cast %9 : i32 to index
    %c0_15 = arith.constant 0 : index
    %11 = vector.load %arg1[%10, %c0_15] : memref<48x32xbf16, #tpu.memory_space<vmem>>, vector<48x32xbf16>
    %cst = arith.constant dense<0.000000e+00> : vector<48x64xf32>
    %12 = tpu.matmul %11, %0, %cst {dimension_numbers = #tpu.dot_dimension_numbers<[1], [0], [0], [1], [0, 0, 1, 1], [], []>} : vector<48x32xbf16>, vector<32x64xbf16>, vector<48x64xf32> -> vector<48x64xf32>
    %13 = vector.broadcast %1 : vector<1x64xf32> to vector<48x64xf32>
    %14 = arith.addf %12, %13 : vector<48x64xf32>
    %cst_16 = arith.constant 0.000000e+00 : f32
    %15 = vector.broadcast %cst_16 : f32 to vector<48x64xf32>
    %16 = arith.maximumf %14, %15 : vector<48x64xf32>
    %17 = arith.truncf %16 : vector<48x64xf32> to vector<48x64xbf16>
    %cst_17 = arith.constant dense<0.000000e+00> : vector<48x48xf32>
    %18 = tpu.matmul %17, %2, %cst_17 {dimension_numbers = #tpu.dot_dimension_numbers<[1], [0], [0], [1], [0, 0, 1, 1], [], []>} : vector<48x64xbf16>, vector<64x48xbf16>, vector<48x48xf32> -> vector<48x48xf32>
    %19 = vector.broadcast %3 : vector<1x48xf32> to vector<48x48xf32>
    %20 = arith.addf %18, %19 : vector<48x48xf32>
    %cst_18 = arith.constant 0.000000e+00 : f32
    %21 = vector.broadcast %cst_18 : f32 to vector<48x48xf32>
    %22 = arith.maximumf %20, %21 : vector<48x48xf32>
    %23 = arith.truncf %22 : vector<48x48xf32> to vector<48x48xbf16>
    %cst_19 = arith.constant dense<0.000000e+00> : vector<48x32xf32>
    %24 = tpu.matmul %23, %4, %cst_19 {dimension_numbers = #tpu.dot_dimension_numbers<[1], [0], [0], [1], [0, 0, 1, 1], [], []>} : vector<48x48xbf16>, vector<48x32xbf16>, vector<48x32xf32> -> vector<48x32xf32>
    %25 = vector.broadcast %5 : vector<1x32xf32> to vector<48x32xf32>
    %26 = arith.addf %24, %25 : vector<48x32xf32>
    %cst_20 = arith.constant 0.000000e+00 : f32
    %27 = vector.broadcast %cst_20 : f32 to vector<48x32xf32>
    %28 = arith.maximumf %26, %27 : vector<48x32xf32>
    %29 = vector.broadcast %6 : vector<1x32xf32> to vector<48x32xf32>
    %30 = arith.mulf %28, %29 : vector<48x32xf32>
    %cst_21 = arith.constant dense<0.000000e+00> : vector<48xf32>
    %31 = vector.multi_reduction <add>, %30, %cst_21 [1] : vector<48x32xf32> to vector<48xf32>
    %32 = vector.shape_cast %31 : vector<48xf32> to vector<48x1xf32>
    %33 = vector.broadcast %7 : vector<1x1xf32> to vector<48x1xf32>
    %34 = arith.addf %32, %33 : vector<48x1xf32>
    %35 = arith.index_cast %9 : i32 to index
    %c0_22 = arith.constant 0 : index
    %36 = vector.load %arg10[%35, %c0_22] : memref<48x1xf32, #tpu.memory_space<vmem>>, vector<48x1xf32>
    tpu.vector_store %arg10[%35, %c0_22], %34 {strides = array<i32>} : memref<48x1xf32, #tpu.memory_space<vmem>>, vector<48x1xf32>,
    %c1_i32 = arith.constant 1 : i32
    return
  }
  func.func @transform_0(%arg0: i32) -> (i32, i32) {
    %c0_i32 = arith.constant 0 : i32
    %c0_i32_0 = arith.constant 0 : i32
    return %arg0, %c0_i32 : i32, i32
  }
  func.func @transform_1(%arg0: i32) -> (i32, i32) {
    %c0_i32 = arith.constant 0 : i32
    %c0_i32_0 = arith.constant 0 : i32
    %c0_i32_1 = arith.constant 0 : i32
    return %c0_i32, %c0_i32_0 : i32, i32
  }
  func.func @transform_2(%arg0: i32) -> (i32, i32) {
    %c0_i32 = arith.constant 0 : i32
    %c0_i32_0 = arith.constant 0 : i32
    %c0_i32_1 = arith.constant 0 : i32
    return %c0_i32, %c0_i32_0 : i32, i32
  }
  func.func @transform_3(%arg0: i32) -> (i32, i32) {
    %c0_i32 = arith.constant 0 : i32
    %c0_i32_0 = arith.constant 0 : i32
    %c0_i32_1 = arith.constant 0 : i32
    return %c0_i32, %c0_i32_0 : i32, i32
  }
  func.func @transform_4(%arg0: i32) -> (i32, i32) {
    %c0_i32 = arith.constant 0 : i32
    %c0_i32_0 = arith.constant 0 : i32
    %c0_i32_1 = arith.constant 0 : i32
    return %c0_i32, %c0_i32_0 : i32, i32
  }
  func.func @transform_5(%arg0: i32) -> (i32, i32) {
    %c0_i32 = arith.constant 0 : i32
    %c0_i32_0 = arith.constant 0 : i32
    %c0_i32_1 = arith.constant 0 : i32
    return %c0_i32, %c0_i32_0 : i32, i32
  }
  func.func @transform_6(%arg0: i32) -> (i32, i32) {
    %c0_i32 = arith.constant 0 : i32
    %c0_i32_0 = arith.constant 0 : i32
    %c0_i32_1 = arith.constant 0 : i32
    return %c0_i32, %c0_i32_0 : i32, i32
  }
  func.func @transform_7(%arg0: i32) -> (i32, i32) {
    %c0_i32 = arith.constant 0 : i32
    %c0_i32_0 = arith.constant 0 : i32
    %c0_i32_1 = arith.constant 0 : i32
    return %c0_i32, %c0_i32_0 : i32, i32
  }
  func.func @transform_8(%arg0: i32) -> (i32, i32) {
    %c0_i32 = arith.constant 0 : i32
    %c0_i32_0 = arith.constant 0 : i32
    %c0_i32_1 = arith.constant 0 : i32
    return %c0_i32, %c0_i32_0 : i32, i32
  }
  func.func @transform_9(%arg0: i32) -> (i32, i32) {
    %c0_i32 = arith.constant 0 : i32
    %c0_i32_0 = arith.constant 0 : i32
    return %arg0, %c0_i32 : i32, i32
  }
}

</mosaic_0001>

<bundles_post_ra>
// kernel: tpu_custom_call.1
= control target key start
LH: loop header
LB: loop body
LE: loop exit
PB: predicated region body
PF: predicated region fallthrough
CT: control target
= control target key end

     0   :  { %v545_v0 = vmov 0.0   ;;  %vm546_vm0 = vmmov 0   ;;  %vm97_vm1 = vcmask 261120   ;;  %vm203_vm2 = vcmask 523264   ;;  %s716_s1 = inlined_call_operand.vmem [shape: bf16[32,64], index: 1, kind: input, shape index: {}]   ;;  %s717_s0 = inlined_call_operand.vmem [shape: bf16[48,32], index: 0, kind: input, shape index: {}]   ;;  %s718_s3 = inlined_call_operand.vmem [shape: bf16[64,48], index: 3, kind: input, shape index: {}]   ;;  %s719_s5 = inlined_call_operand.vmem [shape: bf16[48,32], index: 5, kind: input, shape index: {}]   ;;  %s720_s2 = inlined_call_operand.vmem [shape: f32[1,64], index: 2, kind: input, shape index: {}]   ;;  %s721_s4 = inlined_call_operand.vmem [shape: f32[1,48], index: 4, kind: input, shape index: {}]   ;;  %s722_s8 = inlined_call_operand.<no memory space> [shape: f32[1,1], index: 8, kind: input, shape index: {}]   ;;  %s723_s6 = inlined_call_operand.vmem [shape: f32[1,32], index: 6, kind: input, shape index: {}]   ;;  %s724_s7 = inlined_call_operand.vmem [shape: f32[1,32], index: 7, kind: input, shape index: {}]   ;;  %s725_s9 = inlined_call_operand.vmem [shape: f32[48,1], index: 9, kind: output, shape index: {}]  }
   0x1   :  { %473 = vmatprep.subr.bf16.mxu0 %v545_v0  ;;  %v533_v1 = vld [vmem:[%s716_s1 + $0x8] sm:$0xff]   ;;  %477 = vmatprep.mubr.msk.bf16.mxu0 %vm546_vm0, %v545_v0  ;;  %v534_v2 = vld [vmem:[%s716_s1] sm:$0xff]   ;;  %v537_v4 = vld [vmem:[%s717_s0 + $0x10] sm:$0xff]   ;;  %vm303_vm3 = vcmask 392192   ;;  %vm418_vm4 = vcmask 7168  }
   0x2   :  { %527 = vmatprep.subr.bf16.mxu1 %v545_v0  ;;  %485 = vmatprep.mubr.msk.bf16.mxu1 %vm546_vm0, %v545_v0  ;;  %v535_v3 = vld [vmem:[%s717_s0] sm:$0xff]   ;;  %v538_v5 = vld [vmem:[%s718_s3 + $0x18] sm:$0xff]   ;;  %v536_v6 = vld [vmem:[%s717_s0 + $0x8] sm:$0xff]  }
   0x3   :  { %474 = vmatpush3.bf16.msra.mxu0 %v533_v1  ;;  %529 = vmatpush3.bf16.msra.mxu1 %v533_v1  ;;  %v539_v7 = vld [vmem:[%s718_s3 + $0x10] sm:$0xff]   ;;  %v540_v8 = vld [vmem:[%s718_s3 + $0x8] sm:$0xff]   ;;  %v541_v9 = vld [vmem:[%s718_s3] sm:$0xff]  }
   0x4   :  { %475 = vmatprep.subr.bf16.mxu0 %v545_v0  ;;  %528 = vmatprep.subr.bf16.mxu1 %v545_v0  ;;  %v542_v10 = vld [vmem:[%s719_s5 + $0x10] sm:$0xff]   ;;  %v429_v11 = vld [vmem:[%s720_s2] ss:$0 sm:$0xff]  ;;  %v543_v39 = vld [vmem:[%s719_s5 + $0x8] sm:$0xff]  }
   0x5   :  { %v544_v40 = vld [vmem:[%s719_s5] sm:$0xff]  }
   0x6   :  { %v438_v41 = vld [vmem:[%s721_s4] ss:$0 sm:$0xff] }
   0x7   :  { %476 = vmatpush3.bf16.msra.mxu0 %v534_v2  ;;  %530 = vmatpush3.bf16.msra.mxu1 %v534_v2 }
   0x8   :  { %489 = vmatprep.subr.bf16.mxu1 %v545_v0  ;;  %509 = vmatprep.subr.bf16.mxu0 %v545_v0 }
   0xa   :  { %478 = vmatmul.mubr.msk.bf16.vlgmr.msra.gmra.mxu0 %vm97_vm1, %v535_v3  ;;  %486 = vmatmul.mubr.msk.bf16.vlgmr.msra.gmra.mxu1 %vm97_vm1, %v537_v4 }
   0xb   :  { %481 = vmatprep.mubr.msk.bf16.mxu0 %vm546_vm0, %v545_v0  ;;  %490 = vmatpush3.bf16.msra.mxu1 %v538_v5 }
   0xc   :  { %491 = vmatprep.subr.bf16.mxu1 %v545_v0  ;;  %497 = vmatprep.mubr.msk.bf16.mxu1 %vm546_vm0, %v545_v0 }
   0xd   :  { %510 = vmatpush3.bf16.msra.mxu0 %v542_v10 }
   0xe   :  { %511 = vmatprep.subr.bf16.mxu0 %v545_v0 }
   0xf   :  { %492 = vmatpush3.bf16.msra.mxu1 %v539_v7  ;;  %v446_v7 = vld [vmem:[%s723_s6] ss:$0 sm:$0xff] }
  0x10   :  { %493 = vmatprep.subr.bf16.mxu1 %v545_v0 }
  0x11   :  { %512 = vmatpush3.bf16.msra.mxu0 %v543_v39 }
  0x12   :  { %482 = vmatmul.mubr.msk.bf16.gmra.mxu0 %vm97_vm1, %v536_v6  ;;  %513 = vmatprep.subr.bf16.mxu0 %v545_v0  ;;  %v14_v6 = vstv %s722_s8 }
  0x13   :  { %515 = vmatprep.mubr.msk.bf16.mxu0 %vm546_vm0, %v545_v0  ;;  %494 = vmatpush3.bf16.msra.mxu1 %v540_v8  ;;  %15 = vst [vmem:[#allocation2] sm:$0x1] %v14_v6 }
  0x14   :  { %495 = vmatprep.subr.bf16.mxu1 %v545_v0 }
  0x15   :  { %514 = vmatpush3.bf16.msra.mxu0 %v544_v40 }
  0x17   :  { %496 = vmatpush3.bf16.msra.mxu1 %v541_v9 }
  0xca   :  { %v141_v12 = vpop.f32.mrf.mxu0  ;;  %v157_v13 = vpop.f32.mrf.mxu1 }
  0xcb   :  { %v142_v16 = vadd.f32 %v429_v11, %v141_v12  ;;  %v158_v33 = vadd.f32 %v429_v11, %v157_v13 }
  0xcc   :  { %v479_v14 = vpop.f32.mrf.mxu0  ;;  %v487_v15 = vpop.f32.mrf.mxu1 }
  0xcd   :  { %v164_v22 = vmax.f32 %v142_v16, 0.0  ;;  %v168_v36 = vmax.f32 %v158_v33, 0.0 }
  0xce   :  { %v144_v17 = vpop.f32.mrf.mxu0  ;;  %v160_v18 = vpop.f32.mrf.mxu1 }
  0xcf   :  { %v145_v19 = vadd.f32 %v429_v11, %v144_v17  ;;  %v161_v35 = vadd.f32 %v429_v11, %v160_v18 }
  0xd0   :  { %v480_v20 = vpop.f32.mrf.mxu0  ;;  %v488_v21 = vpop.f32.mrf.mxu1 }
  0xd1   :  { %v165_v23 = vmax.f32 %v145_v19, 0.0  ;;  %v169_v37 = vmax.f32 %v161_v35, 0.0 }
  0xd2   :  { %v149_v24 = vpop.f32.mrf.mxu0 }
  0xd3   :  { %v170_v25 = vpack.c.bf16 %v165_v23, %v164_v22  ;;  %v150_v27 = vadd.f32 %v429_v11, %v149_v24  ;;  %v172_v38 = vpack.c.bf16 %v169_v37, %v168_v36 }
  0xd4   :  { %v483_v26 = vpop.f32.mrf.mxu0 }
  0xd5   :  { %498 = vmatmul.mubr.msk.bf16.vlgmr.msra.gmra.mxu1 %vm203_vm2, %v170_v25  ;;  %v166_v31 = vmax.f32 %v150_v27, 0.0 }
  0xd6   :  { %v152_v28 = vpop.f32.mrf.mxu0  ;;  %501 = vmatprep.mubr.msk.bf16.mxu1 %vm546_vm0, %v545_v0 }
  0xd7   :  { %v153_v29 = vadd.f32 %v429_v11, %v152_v28 }
  0xd8   :  { %v484_v30 = vpop.f32.mrf.mxu0 }
  0xd9   :  { %v167_v32 = vmax.f32 %v153_v29, 0.0 }
  0xdb   :  { %v171_v34 = vpack.c.bf16 %v167_v32, %v166_v31 }
  0xdd   :  { %502 = vmatmul.mubr.msk.bf16.gmra.mxu1 %vm203_vm2, %v171_v34 }
  0xde   :  { %505 = vmatprep.mubr.msk.bf16.mxu1 %vm546_vm0, %v545_v0 }
  0xe5   :  { %506 = vmatmul.mubr.msk.bf16.gmra.mxu1 %vm203_vm2, %v172_v38 }
 0x195   :  { %v247_v42 = vpop.f32.mrf.mxu1 }
 0x196   :  { %v248_v44 = vadd.f32 %v438_v41, %v247_v42 }
 0x197   :  { %v499_v43 = vpop.f32.mrf.mxu1 }
 0x198   :  { %v270_v48 = vmax.f32 %v248_v44, 0.0  ;;  %v454_v44 = vld [vmem:[#allocation2] ss:$0 sm:$0xff] }
 0x199   :  { %v250_v45 = vpop.f32.mrf.mxu1 }
 0x19a   :  { %v251_v46 = vadd.f32 %v438_v41, %v250_v45 }
 0x19b   :  { %v500_v47 = vpop.f32.mrf.mxu1 }
 0x19c   :  { %v271_v49 = vmax.f32 %v251_v46, 0.0 }
 0x19d   :  { %v255_v50 = vpop.f32.mrf.mxu1 }
 0x19e   :  { %v276_v51 = vpack.c.bf16 %v271_v49, %v270_v48  ;;  %v256_v53 = vadd.f32 %v438_v41, %v255_v50 }
 0x19f   :  { %v503_v52 = vpop.f32.mrf.mxu1 }
 0x1a0   :  { %516 = vmatmul.mubr.msk.bf16.vlgmr.msra.gmra.mxu0 %vm303_vm3, %v276_v51  ;;  %v272_v57 = vmax.f32 %v256_v53, 0.0 }
 0x1a1   :  { %v258_v54 = vpop.f32.mrf.mxu1  ;;  %519 = vmatprep.mubr.msk.bf16.mxu0 %vm546_vm0, %v545_v0 }
 0x1a2   :  { %v259_v55 = vadd.f32 %v438_v41, %v258_v54 }
 0x1a3   :  { %v504_v56 = vpop.f32.mrf.mxu1 }
 0x1a4   :  { %v273_v58 = vmax.f32 %v259_v55, 0.0 }
 0x1a5   :  { %v263_v59 = vpop.f32.mrf.mxu1 }
 0x1a6   :  { %v277_v60 = vpack.c.bf16 %v273_v58, %v272_v57  ;;  %v264_v62 = vadd.f32 %v438_v41, %v263_v59 }
 0x1a7   :  { %v507_v61 = vpop.f32.mrf.mxu1 }
 0x1a8   :  { %520 = vmatmul.mubr.msk.bf16.gmra.mxu0 %vm303_vm3, %v277_v60  ;;  %v274_v3 = vmax.f32 %v264_v62, 0.0 }
 0x1a9   :  { %v266_v63 = vpop.f32.mrf.mxu1  ;;  %523 = vmatprep.mubr.msk.bf16.mxu0 %vm546_vm0, %v545_v0  ;;  %v453_v0 = vld [vmem:[%s724_s7] ss:$0 sm:$0xff] }
 0x1aa   :  { %v267_v1 = vadd.f32 %v438_v41, %v266_v63 }
 0x1ab   :  { %v508_v2 = vpop.f32.mrf.mxu1 }
 0x1ac   :  { %v275_v4 = vmax.f32 %v267_v1, 0.0 }
 0x1ae   :  { %v278_v5 = vpack.c.bf16 %v275_v4, %v274_v3 }
 0x1b0   :  { %524 = vmatmul.mubr.msk.bf16.gmra.mxu0 %vm303_vm3, %v278_v5 }
 0x260   :  { %v347_v8 = vpop.f32.mrf.mxu0 }
 0x261   :  { %v348_v9 = vadd.f32 %v446_v7, %v347_v8 }
 0x262   :  { %v517_v10 = vpop.f32.mrf.mxu0 }
 0x263   :  { %v370_v11 = vmax.f32 %v348_v9, 0.0 }
 0x264   :  { %v350_v12 = vpop.f32.mrf.mxu0 }
 0x265   :  { %v351_v13 = vadd.f32 %v446_v7, %v350_v12  ;;  %v382_v14 = vmul.f32 %v453_v0, %v370_v11 }
 0x266   :  { %v518_v15 = vpop.f32.mrf.mxu0 }
 0x267   :  { %v371_v16 = vmax.f32 %v351_v13, 0.0  ;;  %v388_v17 = vsel %vm97_vm1, %v382_v14, 0.0 }
 0x268   :  { %389 = vadd.xlane.f32.xlu0 %v388_v17  ;;  %v355_v18 = vpop.f32.mrf.mxu0 }
 0x269   :  { %v356_v19 = vadd.f32 %v446_v7, %v355_v18  ;;  %v383_v20 = vmul.f32 %v453_v0, %v371_v16 }
 0x26a   :  { %v521_v21 = vpop.f32.mrf.mxu0 }
 0x26b   :  { %v372_v22 = vmax.f32 %v356_v19, 0.0  ;;  %v391_v23 = vsel %vm97_vm1, %v383_v20, 0.0 }
 0x26c   :  { %392 = vadd.xlane.f32.xlu0 %v391_v23  ;;  %v358_v24 = vpop.f32.mrf.mxu0 }
 0x26d   :  { %v359_v25 = vadd.f32 %v446_v7, %v358_v24  ;;  %v384_v26 = vmul.f32 %v453_v0, %v372_v22 }
 0x26e   :  { %v522_v27 = vpop.f32.mrf.mxu0 }
 0x26f   :  { %v373_v28 = vmax.f32 %v359_v25, 0.0  ;;  %v394_v29 = vsel %vm97_vm1, %v384_v26, 0.0 }
 0x270   :  { %395 = vadd.xlane.f32.xlu1 %v394_v29  ;;  %v363_v30 = vpop.f32.mrf.mxu0 }
 0x271   :  { %v364_v31 = vadd.f32 %v446_v7, %v363_v30  ;;  %v385_v32 = vmul.f32 %v453_v0, %v373_v28 }
 0x272   :  { %v525_v33 = vpop.f32.mrf.mxu0 }
 0x273   :  { %v374_v34 = vmax.f32 %v364_v31, 0.0  ;;  %v397_v35 = vsel %vm97_vm1, %v385_v32, 0.0 }
 0x274   :  { %398 = vadd.xlane.f32.xlu1 %v397_v35  ;;  %v366_v36 = vpop.f32.mrf.mxu0 }
 0x275   :  { %v367_v37 = vadd.f32 %v446_v7, %v366_v36  ;;  %v386_v38 = vmul.f32 %v453_v0, %v374_v34 }
 0x276   :  { %v526_v39 = vpop.f32.mrf.mxu0 }
 0x277   :  { %v375_v40 = vmax.f32 %v367_v37, 0.0  ;;  %v400_v41 = vsel %vm97_vm1, %v386_v38, 0.0 }
 0x278   :  { %401 = vadd.xlane.f32.xlu0 %v400_v41 }
 0x279   :  { %v387_v42 = vmul.f32 %v453_v0, %v375_v40 }
 0x27b   :  { %v403_v43 = vsel %vm97_vm1, %v387_v42, 0.0 }
 0x27c   :  { %404 = vadd.xlane.f32.xlu1 %v403_v43 }
 0x2f1   :  { %v390_v45 = vpop.xlane.xlu0 %389 }
 0x2f2   :  { %v412_v46 = vadd.f32 %v454_v44, %v390_v45 }
 0x2f4   :  { %419 = vst.msk [vmem:[%s725_s9] sm:$0xff] %vm418_vm4, %v412_v46 }
 0x2f5   :  { %v393_v47 = vpop.xlane.xlu0 %392 }
 0x2f6   :  { %v413_v48 = vadd.f32 %v454_v44, %v393_v47 }
 0x2f8   :  { %420 = vst.msk [vmem:[%s725_s9 + $0x8] sm:$0xff] %vm418_vm4, %v413_v48 }
 0x2f9   :  { %v396_v49 = vpop.xlane.xlu1 %395 }
 0x2fa   :  { %v414_v50 = vadd.f32 %v454_v44, %v396_v49 }
 0x2fc   :  { %421 = vst.msk [vmem:[%s725_s9 + $0x10] sm:$0xff] %vm418_vm4, %v414_v50 }
 0x2fd   :  { %v399_v51 = vpop.xlane.xlu1 %398 }
 0x2fe   :  { %v415_v52 = vadd.f32 %v454_v44, %v399_v51 }
 0x300   :  { %422 = vst.msk [vmem:[%s725_s9 + $0x18] sm:$0xff] %vm418_vm4, %v415_v52 }
 0x301   :  { %v402_v53 = vpop.xlane.xlu0 %401 }
 0x302   :  { %v416_v54 = vadd.f32 %v454_v44, %v402_v53 }
 0x304   :  { %423 = vst.msk [vmem:[%s725_s9 + $0x20] sm:$0xff] %vm418_vm4, %v416_v54 }
 0x305   :  { %v405_v55 = vpop.xlane.xlu1 %404 }
 0x306   :  { %v417_v56 = vadd.f32 %v454_v44, %v405_v55 }
 0x308   :  { %424 = vst.msk [vmem:[%s725_s9 + $0x28] sm:$0xff] %vm418_vm4, %v417_v56 }

</bundles_post_ra>
